<compile_context>
chip_gen: v7x
topology: tpu7x:2x2x1
jax: 0.10.0
libtpu: 0.0.40
codegen_flags: <defaults>
</compile_context>

<pallas_src>
import functools

import jax
import jax.numpy as jnp
from jax.experimental import pallas as pl
from jax.experimental.pallas import tpu as pltpu


def _mlp_kernel(x_ref, *refs, num_glu_layers, hidden):
    # refs layout: [W0, b0, W1, b1, ..., Wf, bf, out_ref]
    #   Wi : (2*hidden, fin)  bf16   (PyTorch nn.Linear.weight layout)
    #   bi : (2*hidden, 1)    f32
    #   Wf : (outputs, hidden) bf16
    #   bf : (outputs, 1)      f32
    out_ref = refs[-1]
    prefs = refs[:-1]

    x = x_ref[...]  # (fin, tile_n) f32, batch on the lane axis

    for i in range(num_glu_layers):
        w = prefs[2 * i][...]
        b = prefs[2 * i + 1][...]
        # One fused dot per GLU layer; f32 accumulation on the MXU.
        h = jnp.dot(w, x.astype(jnp.bfloat16),
                    preferred_element_type=jnp.float32) + b   # (2*hidden, tile_n)
        # Value/gate split on the sublane axis (hidden is a multiple of 8 -> free).
        a = h[:hidden, :]
        g = h[hidden:, :]
        # sigmoid(g) = 1 / (1 + exp(-g)): exp and approx reciprocal both ride the EUP.
        sig = pl.reciprocal(1.0 + jnp.exp(-g), approx=True)
        x = a * sig                                            # f32 elementwise (v5e-safe)

    wf = prefs[-2][...]
    bf = prefs[-1][...]
    y = jnp.dot(wf, x.astype(jnp.bfloat16),
                preferred_element_type=jnp.float32) + bf       # (outputs, tile_n)
    out_ref[...] = y.astype(out_ref.dtype)


def init_mlp_params(key, inputs, outputs, hidden, hidden_layers):
    """PyTorch nn.Linear default init U(-1/sqrt(in), 1/sqrt(in)).

    Weights kept in PyTorch-native (out_features, in_features) order (so the
    kernel computes W @ X on the transposed activations); biases are stored as
    (out_features, 1) columns.  All params are returned in f32; the forward
    wrapper casts weight matrices to bf16 for the MXU.
    """
    params = []
    fin = inputs
    for _ in range(hidden_layers):
        key, kw, kb = jax.random.split(key, 3)
        bound = 1.0 / (fin ** 0.5)
        w = jax.random.uniform(kw, (2 * hidden, fin), jnp.float32, -bound, bound)
        b = jax.random.uniform(kb, (2 * hidden, 1), jnp.float32, -bound, bound)
        params += [w, b]
        fin = hidden
    key, kw, kb = jax.random.split(key, 3)
    bound = 1.0 / (hidden ** 0.5)
    wf = jax.random.uniform(kw, (outputs, hidden), jnp.float32, -bound, bound)
    bf = jax.random.uniform(kb, (outputs, 1), jnp.float32, -bound, bound)
    params += [wf, bf]
    return params


def _round_up(v, m):
    return (v + m - 1) // m * m


def mlp_forward(x, params, *, hidden_layers, tile_n=2048):
    """x: (N, inputs) f32 -> (N, outputs) f32."""
    N, in_features = x.shape
    two_hidden = params[0].shape[0]
    hidden = two_hidden // 2
    outputs = params[-2].shape[0]

    # Lane-dense tiling: batch rides the lane axis, tile must be a multiple of 128.
    tile_n = max(128, (tile_n // 128) * 128)
    if N >= 256:
        # Keep >= 2 grid steps so both v7x TensorCores / megacore get a batch shard.
        tile_n = min(tile_n, max(128, _round_up(N // 2, 128)))
    tile_n = min(tile_n, _round_up(N, 128))
    grid_n = pl.cdiv(N, tile_n)
    n_padded = grid_n * tile_n

    # Transpose once in XLA; pad ragged batches (padded columns are sliced off).
    x_t = x.T                                               # (in_features, N)
    if n_padded != N:
        x_t = jnp.pad(x_t, ((0, 0), (0, n_padded - N)))

    # Weight matrices (even indices) in bf16 for the MXU; biases stay f32.
    kparams = [p.astype(jnp.bfloat16) if i % 2 == 0 else p
               for i, p in enumerate(params)]

    # x tiled along the batch (lane) axis; params are full, resident blocks
    # (constant index_map -> DMA'd once, never re-fetched across grid steps).
    in_specs = [pl.BlockSpec((in_features, tile_n), lambda i: (0, i))]
    in_specs += [pl.BlockSpec(p.shape, lambda i: (0, 0)) for p in kparams]
    out_spec = pl.BlockSpec((outputs, tile_n), lambda i: (0, i))

    # Advisory cost estimate (2*M*K*N flops per dot; sigmoid = exp + recip = 2 EUP ops).
    flops_per_row = 0
    fin = in_features
    for _ in range(hidden_layers):
        flops_per_row += 2 * fin * (2 * hidden)
        fin = hidden
    flops_per_row += 2 * hidden * outputs
    cost = pl.CostEstimate(
        flops=int(n_padded * flops_per_row),
        transcendentals=int(2 * n_padded * hidden * hidden_layers),
        bytes_accessed=int(x_t.size * x_t.dtype.itemsize
                           + n_padded * outputs * 4
                           + sum(int(p.size) * p.dtype.itemsize for p in kparams)),
    )

    kernel = functools.partial(_mlp_kernel,
                               num_glu_layers=hidden_layers, hidden=hidden)

    out_t = pl.pallas_call(
        kernel,
        out_shape=jax.ShapeDtypeStruct((outputs, n_padded), jnp.float32),
        grid_spec=pltpu.PrefetchScalarGridSpec(
            num_scalar_prefetch=0,
            grid=(grid_n,),
            in_specs=in_specs,
            out_specs=out_spec,
        ),
        compiler_params=pltpu.CompilerParams(
            dimension_semantics=("parallel",),
        ),
        cost_estimate=cost,
    )(x_t, *kparams)

    out_t = out_t[:, :N] if n_padded != N else out_t
    return out_t.T                                          # (N, outputs)


def mlp_reference(x, params, *, hidden_layers, dot_dtype=jnp.float32):
    """Pure-JAX reference.

    dot_dtype=bfloat16 mirrors the kernel numerics (bf16 operands, f32 accum);
    dot_dtype=float32 is the true f32 PyTorch-equivalent forward.
    """
    two_hidden = params[0].shape[0]
    hidden = two_hidden // 2
    h = x.T
    for i in range(hidden_layers):
        w, b = params[2 * i], params[2 * i + 1]
        z = jnp.dot(w.astype(dot_dtype), h.astype(dot_dtype),
                    preferred_element_type=jnp.float32) + b
        h = z[:hidden] * jax.nn.sigmoid(z[hidden:])
    wf, bf = params[-2], params[-1]
    y = jnp.dot(wf.astype(dot_dtype), h.astype(dot_dtype),
                preferred_element_type=jnp.float32) + bf
    return y.T


if __name__ == "__main__":
    # Shapes consistent with the module's forward: x is [batch, inputs].
    INPUTS, OUTPUTS, HIDDEN, HIDDEN_LAYERS = 16, 8, 32, 2
    BATCH = 1024  # -> tile_n=512, grid of 2 (both v7x TensorCores busy)

    key = jax.random.PRNGKey(0)
    kx, kp = jax.random.split(key)
    x = jax.random.normal(kx, (BATCH, INPUTS), jnp.float32)
    params = init_mlp_params(kp, INPUTS, OUTPUTS, HIDDEN, HIDDEN_LAYERS)

    out = mlp_forward(x, params, hidden_layers=HIDDEN_LAYERS)
    out = jax.block_until_ready(out)
    assert out.shape == (BATCH, OUTPUTS)

    # Numerics-mirroring check (bf16 dots, like the kernel).
    ref_bf16 = mlp_reference(x, params, hidden_layers=HIDDEN_LAYERS,
                             dot_dtype=jnp.bfloat16)
    assert jnp.allclose(out, ref_bf16, atol=1e-2, rtol=1e-2), "mismatch vs bf16 reference"

    # True f32 check (addresses the review's drift concern; looser tolerance
    # covers the bf16 weight/input rounding + approx-reciprocal sigmoid).
    ref_f32 = mlp_reference(x, params, hidden_layers=HIDDEN_LAYERS,
                            dot_dtype=jnp.float32)
    assert jnp.allclose(out, ref_f32, atol=2e-2, rtol=2e-2), "mismatch vs f32 reference"

    print("KERNEL_OK")
</pallas_src>

<mosaic_0001>
module attributes {stable_mosaic.version = 11 : i64} {
  func.func @_mlp_kernel(%arg0: i32, %arg1: memref<16x512xf32, #tpu.memory_space<vmem>>, %arg2: memref<64x16xbf16, #tpu.memory_space<vmem>>, %arg3: memref<64x1xf32, #tpu.memory_space<vmem>>, %arg4: memref<64x32xbf16, #tpu.memory_space<vmem>>, %arg5: memref<64x1xf32, #tpu.memory_space<vmem>>, %arg6: memref<8x32xbf16, #tpu.memory_space<vmem>>, %arg7: memref<8x1xf32, #tpu.memory_space<vmem>>, %arg8: memref<8x512xf32, #tpu.memory_space<vmem>>) attributes {dimension_semantics = [#tpu.dimension_semantics<parallel>], iteration_bounds = array<i64: 2>, scalar_prefetch = 0 : i64, scratch_operands = 0 : i64, tpu.core_type = #tpu.core_type<tc>, window_params = [{transform_indices = @transform_0, window_bounds = array<i64: 16, 512>}, {pipeline_mode = #tpu.pipeline_mode<synchronous>, transform_indices = @transform_1, window_bounds = array<i64: 64, 16>}, {pipeline_mode = #tpu.pipeline_mode<synchronous>, transform_indices = @transform_2, window_bounds = array<i64: 64, 1>}, {pipeline_mode = #tpu.pipeline_mode<synchronous>, transform_indices = @transform_3, window_bounds = array<i64: 64, 32>}, {pipeline_mode = #tpu.pipeline_mode<synchronous>, transform_indices = @transform_4, window_bounds = array<i64: 64, 1>}, {pipeline_mode = #tpu.pipeline_mode<synchronous>, transform_indices = @transform_5, window_bounds = array<i64: 8, 32>}, {pipeline_mode = #tpu.pipeline_mode<synchronous>, transform_indices = @transform_6, window_bounds = array<i64: 8, 1>}, {transform_indices = @transform_7, window_bounds = array<i64: 8, 512>}]} {
    %c0 = arith.constant 0 : index
    %c0_0 = arith.constant 0 : index
    %0 = vector.load %arg1[%c0, %c0_0] : memref<16x512xf32, #tpu.memory_space<vmem>>, vector<16x512xf32>
    %c0_1 = arith.constant 0 : index
    %c0_2 = arith.constant 0 : index
    %1 = vector.load %arg2[%c0_1, %c0_2] : memref<64x16xbf16, #tpu.memory_space<vmem>>, vector<64x16xbf16>
    %c0_3 = arith.constant 0 : index
    %c0_4 = arith.constant 0 : index
    %2 = vector.load %arg3[%c0_3, %c0_4] : memref<64x1xf32, #tpu.memory_space<vmem>>, vector<64x1xf32>
    %3 = arith.truncf %0 : vector<16x512xf32> to vector<16x512xbf16>
    %cst = arith.constant dense<0.000000e+00> : vector<64x512xf32>
    %4 = tpu.matmul %1, %3, %cst {dimension_numbers = #tpu.dot_dimension_numbers<[1], [0], [0], [1], [0, 0, 1, 1], [], []>} : vector<64x16xbf16>, vector<16x512xbf16>, vector<64x512xf32> -> vector<64x512xf32>
    %5 = vector.broadcast %2 : vector<64x1xf32> to vector<64x512xf32>
    %6 = arith.addf %4, %5 : vector<64x512xf32>
    %7 = vector.extract_strided_slice %6 {offsets = [0, 0], sizes = [32, 512], strides = [1, 1]} : vector<64x512xf32> to vector<32x512xf32>
    %8 = vector.extract_strided_slice %6 {offsets = [32, 0], sizes = [32, 512], strides = [1, 1]} : vector<64x512xf32> to vector<32x512xf32>
    %cst_5 = arith.constant 0.000000e+00 : f32
    %9 = vector.broadcast %cst_5 : f32 to vector<32x512xf32>
    %10 = arith.subf %9, %8 : vector<32x512xf32>
    %11 = math.exp %10 : vector<32x512xf32>
    %cst_6 = arith.constant 1.000000e+00 : f32
    %12 = vector.broadcast %cst_6 : f32 to vector<32x512xf32>
    %13 = arith.addf %12, %11 : vector<32x512xf32>
    %14 = tpu.reciprocal %13 {approx = true} : vector<32x512xf32> -> vector<32x512xf32>
    %15 = arith.mulf %7, %14 : vector<32x512xf32>
    %c0_7 = arith.constant 0 : index
    %c0_8 = arith.constant 0 : index
    %16 = vector.load %arg4[%c0_7, %c0_8] : memref<64x32xbf16, #tpu.memory_space<vmem>>, vector<64x32xbf16>
    %c0_9 = arith.constant 0 : index
    %c0_10 = arith.constant 0 : index
    %17 = vector.load %arg5[%c0_9, %c0_10] : memref<64x1xf32, #tpu.memory_space<vmem>>, vector<64x1xf32>
    %18 = arith.truncf %15 : vector<32x512xf32> to vector<32x512xbf16>
    %cst_11 = arith.constant dense<0.000000e+00> : vector<64x512xf32>
    %19 = tpu.matmul %16, %18, %cst_11 {dimension_numbers = #tpu.dot_dimension_numbers<[1], [0], [0], [1], [0, 0, 1, 1], [], []>} : vector<64x32xbf16>, vector<32x512xbf16>, vector<64x512xf32> -> vector<64x512xf32>
    %20 = vector.broadcast %17 : vector<64x1xf32> to vector<64x512xf32>
    %21 = arith.addf %19, %20 : vector<64x512xf32>
    %22 = vector.extract_strided_slice %21 {offsets = [0, 0], sizes = [32, 512], strides = [1, 1]} : vector<64x512xf32> to vector<32x512xf32>
    %23 = vector.extract_strided_slice %21 {offsets = [32, 0], sizes = [32, 512], strides = [1, 1]} : vector<64x512xf32> to vector<32x512xf32>
    %cst_12 = arith.constant 0.000000e+00 : f32
    %24 = vector.broadcast %cst_12 : f32 to vector<32x512xf32>
    %25 = arith.subf %24, %23 : vector<32x512xf32>
    %26 = math.exp %25 : vector<32x512xf32>
    %cst_13 = arith.constant 1.000000e+00 : f32
    %27 = vector.broadcast %cst_13 : f32 to vector<32x512xf32>
    %28 = arith.addf %27, %26 : vector<32x512xf32>
    %29 = tpu.reciprocal %28 {approx = true} : vector<32x512xf32> -> vector<32x512xf32>
    %30 = arith.mulf %22, %29 : vector<32x512xf32>
    %c0_14 = arith.constant 0 : index
    %c0_15 = arith.constant 0 : index
    %31 = vector.load %arg6[%c0_14, %c0_15] : memref<8x32xbf16, #tpu.memory_space<vmem>>, vector<8x32xbf16>
    %c0_16 = arith.constant 0 : index
    %c0_17 = arith.constant 0 : index
    %32 = vector.load %arg7[%c0_16, %c0_17] : memref<8x1xf32, #tpu.memory_space<vmem>>, vector<8x1xf32>
    %33 = arith.truncf %30 : vector<32x512xf32> to vector<32x512xbf16>
    %cst_18 = arith.constant dense<0.000000e+00> : vector<8x512xf32>
    %34 = tpu.matmul %31, %33, %cst_18 {dimension_numbers = #tpu.dot_dimension_numbers<[1], [0], [0], [1], [0, 0, 1, 1], [], []>} : vector<8x32xbf16>, vector<32x512xbf16>, vector<8x512xf32> -> vector<8x512xf32>
    %35 = vector.broadcast %32 : vector<8x1xf32> to vector<8x512xf32>
    %36 = arith.addf %34, %35 : vector<8x512xf32>
    %c0_19 = arith.constant 0 : index
    %c0_20 = arith.constant 0 : index
    %37 = vector.load %arg8[%c0_19, %c0_20] : memref<8x512xf32, #tpu.memory_space<vmem>>, vector<8x512xf32>
    tpu.vector_store %arg8[%c0_19, %c0_20], %36 {strides = array<i32>} : memref<8x512xf32, #tpu.memory_space<vmem>>, vector<8x512xf32>,
    return
  }
  func.func @transform_0(%arg0: i32) -> (i32, i32) {
    %c0_i32 = arith.constant 0 : i32
    %c0_i32_0 = arith.constant 0 : i32
    return %c0_i32, %arg0 : i32, i32
  }
  func.func @transform_1(%arg0: i32) -> (i32, i32) {
    %c0_i32 = arith.constant 0 : i32
    %c0_i32_0 = arith.constant 0 : i32
    %c0_i32_1 = arith.constant 0 : i32
    return %c0_i32, %c0_i32_0 : i32, i32
  }
  func.func @transform_2(%arg0: i32) -> (i32, i32) {
    %c0_i32 = arith.constant 0 : i32
    %c0_i32_0 = arith.constant 0 : i32
    %c0_i32_1 = arith.constant 0 : i32
    return %c0_i32, %c0_i32_0 : i32, i32
  }
  func.func @transform_3(%arg0: i32) -> (i32, i32) {
    %c0_i32 = arith.constant 0 : i32
    %c0_i32_0 = arith.constant 0 : i32
    %c0_i32_1 = arith.constant 0 : i32
    return %c0_i32, %c0_i32_0 : i32, i32
  }
  func.func @transform_4(%arg0: i32) -> (i32, i32) {
    %c0_i32 = arith.constant 0 : i32
    %c0_i32_0 = arith.constant 0 : i32
    %c0_i32_1 = arith.constant 0 : i32
    return %c0_i32, %c0_i32_0 : i32, i32
  }
  func.func @transform_5(%arg0: i32) -> (i32, i32) {
    %c0_i32 = arith.constant 0 : i32
    %c0_i32_0 = arith.constant 0 : i32
    %c0_i32_1 = arith.constant 0 : i32
    return %c0_i32, %c0_i32_0 : i32, i32
  }
  func.func @transform_6(%arg0: i32) -> (i32, i32) {
    %c0_i32 = arith.constant 0 : i32
    %c0_i32_0 = arith.constant 0 : i32
    %c0_i32_1 = arith.constant 0 : i32
    return %c0_i32, %c0_i32_0 : i32, i32
  }
  func.func @transform_7(%arg0: i32) -> (i32, i32) {
    %c0_i32 = arith.constant 0 : i32
    %c0_i32_0 = arith.constant 0 : i32
    return %c0_i32, %arg0 : i32, i32
  }
}

</mosaic_0001>

<bundles_post_ra>
// kernel: tpu_custom_call.1
= control target key start
LH: loop header
LB: loop body
LE: loop exit
PB: predicated region body
PF: predicated region fallthrough
CT: control target
= control target key end

     0   :  { %12 = vsyncpa [#allocation4], 0  ;;  %s1828_s0 = inlined_call_operand.vmem [shape: f32[16,1024], index: 0, kind: input, shape index: {}]   ;;  %s1829_s1 = inlined_call_operand.vmem [shape: bf16[64,16], index: 1, kind: input, shape index: {}]   ;;  %s1830_s2 = inlined_call_operand.vmem [shape: f32[64,1], index: 2, kind: input, shape index: {}]   ;;  %s1831_s3 = inlined_call_operand.vmem [shape: bf16[64,32], index: 3, kind: input, shape index: {}]   ;;  %s1832_s4 = inlined_call_operand.vmem [shape: f32[64,1], index: 4, kind: input, shape index: {}]   ;;  %s1833_s5 = inlined_call_operand.vmem [shape: bf16[8,32], index: 5, kind: input, shape index: {}]   ;;  %s1834_s6 = inlined_call_operand.vmem [shape: f32[8,1], index: 6, kind: input, shape index: {}]   ;;  %s1835_s7 = inlined_call_operand.hbm [shape: f32[8,1024], index: 7, kind: output, shape index: {}]  }
   0x1   :  { %14 = vsyncpa [#allocation4 + $0x1], 0  ;;  %s1506_s24 = smov 0   ;;  %s1508_s25 = smov 0  }
   0x2   :  { %s1510_s26 = smov 0   ;;  %s1512_s27 = smov 0  }
   0x3 LB: > { %s1179_s28 = sadd.s32 4294967295, %s1462_s27   ;;  %s1180_s29 = sadd.s32 4294967294, %s1462_s27   ;;  %s1462_s27 = sphi %s1512_s27, %s1841_s27   ;;  %s1458_s26 = sphi %s1510_s26, %s1840_s26   ;;  %s1454_s25 = sphi %s1508_s25, %s1839_s25   ;;  %s1450_s24 = sphi %s1506_s24, %s1838_s24  }
   0x4   : > { %s1529_s30 = sadd.s32 1, %s1462_s27   ;;  %s27_s8 = sadd.s32 1, %s1458_s26 }
   0x5   : > { %s24_s9 = ssub.s32 %s1462_s27, %s1529_s30  ;;  %p34_p0 = scmp.ne.s32.totalorder %s1458_s26, %s1454_s25 }
   0x6   : > { %p25_p1 = scmp.eq.s32.totalorder %s24_s9, 0  ;;  %p35_p2 = scmp.eq.s32.totalorder %s1462_s27, 0 }
   0x7   : > { %p190_p3 = scmp.eq.s32.totalorder %s1179_s28, 1  ;;  %p195_p4 = scmp.ne.s32.totalorder %s1454_s25, %s1450_s24 }
   0x8   : > { %s1542_s10 = scalar_select %p25_p1, %s1458_s26, %s27_s8  }
   0x9   : > { %p36_p5 = por %p35_p2, %p34_p0  ;;  %p1544_p6 = por %p190_p3, %p34_p0 }
   0xa   : > { %p196_p7 = scmp.eq.s32.totalorder %s1180_s29, 1  ;;  %p1182_p9 = scmp.ge.s32.totalorder %s1462_s27, 2 }
   0xc   : > { %p1548_p8 = por %p196_p7, %p195_p4  ;;  %230 = sbr.rel (%p1182_p9) target bundleno = 27 (0x1b), region = 40 }
  0x13   : > { %233 = sbr.rel (!%p36_p5) target bundleno = 27 (0x1b), region = 44  ;;  %s235_s13 = sand.u32 (%p36_p5), 1, %s1458_s26  }
  0x14   : > { %s1220_s14 = sshll.u32 (%p36_p5), %s1462_s27, 5  ;;  %s1183_s15 = sshll.u32 (%p36_p5), %s235_s13, 6 }
  0x15   : > { %s240_s18 = scalar_lea.vmem (%p36_p5), %s1828_s0, %s1220_s14  ;;  %s237_s19 = scalar_lea.vmem (%p36_p5), [#allocation2], %s1183_s15 }
  0x16   : > { %v253_v0 = vld [vmem:[%s240_s18] sm:$0xff] (%p36_p5)  ;;  %v255_v1 = vld [vmem:[%s240_s18 + $0x8] sm:$0xff] (%p36_p5)  ;;  %v257_v2 = vld [vmem:[%s240_s18 + $0x10] sm:$0xff] (%p36_p5) }
  0x17   : > { %254 = vst [vmem:[%s237_s19] sm:$0xff] (%p36_p5), %v253_v0  ;;  %256 = vst [vmem:[%s237_s19 + $0x8] sm:$0xff] (%p36_p5), %v255_v1  ;;  %v259_v3 = vld [vmem:[%s240_s18 + $0x18] sm:$0xff] (%p36_p5)  ;;  %v261_v4 = vld [vmem:[%s240_s18 + $0x40] sm:$0xff] (%p36_p5) }
  0x18   : > { %258 = vst [vmem:[%s237_s19 + $0x10] sm:$0xff] (%p36_p5), %v257_v2  ;;  %v263_v5 = vld [vmem:[%s240_s18 + $0x48] sm:$0xff] (%p36_p5)  ;;  %260 = vst [vmem:[%s237_s19 + $0x18] sm:$0xff] (%p36_p5), %v259_v3  ;;  %v265_v6 = vld [vmem:[%s240_s18 + $0x50] sm:$0xff] (%p36_p5) }
  0x19   : > { %262 = vst [vmem:[%s237_s19 + $0x20] sm:$0xff] (%p36_p5), %v261_v4  ;;  %264 = vst [vmem:[%s237_s19 + $0x28] sm:$0xff] (%p36_p5), %v263_v5  ;;  %v267_v7 = vld [vmem:[%s240_s18 + $0x58] sm:$0xff] (%p36_p5) }
  0x1a   : > { %266 = vst [vmem:[%s237_s19 + $0x30] sm:$0xff] %v265_v6  ;;  %268 = vst [vmem:[%s237_s19 + $0x38] sm:$0xff] %v267_v7 }
  0x1b PF: > { %p1186_p10 = scmp.ge.s32.totalorder %s1462_s27, 1  ;;  %p273_p11 = scmp.lt.s32.totalorder %s1462_s27, 3 }
  0x1d   : > { %p274_p12 = pnand %p1186_p10, %p273_p11 }
  0x1e   : > { %s1563_s20 = sand.u32 (!%p274_p12), 1, %s1454_s25   ;;  %v1464_v8 = vmov (!%p274_p12), 0   ;;  %v1264_v21 = vld [vmem:[%s1829_s1] sm:$0xff] (!%p274_p12)   ;;  %vm402_vm0 = vcmask (!%p274_p12), 130048   ;;  %v336_v23 = vld [vmem:[%s1830_s2 + $0x30] sm:$0xff] (!%p274_p12)  ;;  %v335_v24 = vld [vmem:[%s1830_s2 + $0x28] sm:$0xff] (!%p274_p12) }
  0x1f   : > { %277 = sbr.rel (%p274_p12) target bundleno = 857 (0x359), region = 67  ;;  %s1187_s21 = sshll.u32 (!%p274_p12), %s1563_s20, 6  ;;  %447 = vmatprep.mubr.bf16.mxu0 (!%p274_p12), %v1464_v8  ;;  %520 = vmatprep.mubr.bf16.mxu1 (!%p274_p12), %v1464_v8  ;;  %v334_v22 = vld [vmem:[%s1830_s2 + $0x20] sm:$0xff] (!%p274_p12)  ;;  %v337_v25 = vld [vmem:[%s1830_s2 + $0x38] sm:$0xff] (!%p274_p12)  ;;  %v1265_v26 = vld [vmem:[%s1829_s1 + $0x8] sm:$0xff] (!%p274_p12)   ;;  %vm741_vm1 = vcmask (!%p274_p12), 261120  }
  0x20   : > { %1262 = vset.pattern.permute.xlu0 (!%p274_p12), %v1464_v8  ;;  %1263 = vset.pattern.permute.xlu1 (!%p274_p12), %v1464_v8  ;;  %s282_s22 = scalar_lea.vmem (!%p274_p12), [#allocation2], %s1187_s21  ;;  %v330_v27 = vld [vmem:[%s1830_s2] sm:$0xff] (!%p274_p12)  ;;  %v331_v28 = vld [vmem:[%s1830_s2 + $0x8] sm:$0xff] (!%p274_p12)  ;;  %v332_v29 = vld [vmem:[%s1830_s2 + $0x10] sm:$0xff] (!%p274_p12)  ;;  %s1188_s23 = sshll.u32 (!%p274_p12), %s1563_s20, 5 }
  0x21   : > { %v315_v9 = vld [vmem:[%s282_s22 + $0x8] sm:$0xff] (!%p274_p12)  ;;  %v317_v11 = vld [vmem:[%s282_s22 + $0x18] sm:$0xff] (!%p274_p12)  ;;  %v314_v14 = vld [vmem:[%s282_s22] sm:$0xff] (!%p274_p12)  ;;  %364 = vperm.xlu0 (!%p274_p12), %1262, %v334_v22   ;;  %374 = vperm.xlu1 (!%p274_p12), %1263, %v336_v23   ;;  %s1221_s29 = sshll.u32 (!%p274_p12), %s1179_s28, 9  ;;  %s310_s8 = scalar_lea.vmem (!%p274_p12), [#allocation3], %s1188_s23 }
  0x22   : > { %v319_v10 = vld [vmem:[%s282_s22 + $0x28] sm:$0xff] (!%p274_p12)  ;;  %v321_v13 = vld [vmem:[%s282_s22 + $0x38] sm:$0xff] (!%p274_p12)  ;;  %v318_v15 = vld [vmem:[%s282_s22 + $0x20] sm:$0xff] (!%p274_p12)  ;;  %s1115_s9 = sshll.u32 (!%p274_p12), %s310_s8, 4  ;;  %s1784_s15 = scalar_lea.hbm (!%p274_p12), %s1835_s7, %s1221_s29  ;;  %s1786_s9 = int_to_ptr.vmem [resolvable:$true] %s1115_s9 }
  0x23   : > { %v339_v12 = vpack.c.bf16 (!%p274_p12), %v319_v10, %v315_v9  ;;  %v341_v16 = vpack.c.bf16 (!%p274_p12), %v321_v13, %v317_v11  ;;  %v338_v17 = vpack.c.bf16 (!%p274_p12), %v318_v15, %v314_v14  ;;  %v316_v18 = vld [vmem:[%s282_s22 + $0x10] sm:$0xff] (!%p274_p12)  ;;  %v333_v30 = vld [vmem:[%s1830_s2 + $0x18] sm:$0xff] (!%p274_p12)  ;;  %v669_v31 = vld [vmem:[%s1832_s4 + $0x20] sm:$0xff] (!%p274_p12)  ;;  %s1101_s28 = scalar_lea.sflag (!%p274_p12), [#allocation4], %s1563_s20  ;;  %s1400_s16 = scalar_lea.vmem (!%p274_p12), %s1786_s9, 512 }
  0x24   : > { %v320_v19 = vld [vmem:[%s282_s22 + $0x30] sm:$0xff] (!%p274_p12)  ;;  %v670_v33 = vld [vmem:[%s1832_s4 + $0x28] sm:$0xff] (!%p274_p12)  ;;  %v672_v35 = vld [vmem:[%s1832_s4 + $0x38] sm:$0xff] (!%p274_p12)  ;;  %p1401_p13 = scmp.ne.s32.totalorder (!%p274_p12), %s1786_s9, %s1400_s16  ;;  %s1465_s17 = smov (!%p274_p12), [#allocation3]  }
  0x25   : > { %415 = vmatprep.subr.bf16.mxu0 (!%p274_p12), %v339_v12  ;;  %v340_v20 = vpack.c.bf16 (!%p274_p12), %v320_v19, %v316_v18  ;;  %488 = vmatprep.subr.bf16.mxu1 (!%p274_p12), %v341_v16  ;;  %v1266_v32 = vld [vmem:[%s1829_s1 + $0x10] sm:$0xff] (!%p274_p12)   ;;  %v665_v36 = vld [vmem:[%s1832_s4] sm:$0xff] (!%p274_p12)  ;;  %v1267_v37 = vld [vmem:[%s1829_s1 + $0x18] sm:$0xff] (!%p274_p12)   ;;  %s1404_s18 = sshll.u32 (!%p274_p12), %s1465_s17, 4  ;;  %s1405_s18 = int_to_ptr.vmem [resolvable:$false] %s1404_s18 }
  0x26   : > { %416 = vmatpush1.bf16.msra.mxu0 %v338_v17  ;;  %369 = vperm.xlu0 %1262, %v335_v24   ;;  %v671_v34 = vld [vmem:[%s1832_s4 + $0x30] sm:$0xff]  ;;  %v666_v38 = vld [vmem:[%s1832_s4 + $0x8] sm:$0xff]  ;;  %v668_v40 = vld [vmem:[%s1832_s4 + $0x18] sm:$0xff]  ;;  %p1402_p0 = pnand %p1401_p13, %p1544_p6  ;;  %s1406_s19 = scalar_lea.vmem %s1405_s18, 1024 }
  0x27   : > { %489 = vmatpush1.bf16.msra.mxu1 %v340_v20  ;;  %379 = vperm.xlu1 %1263, %v337_v25   ;;  %v667_v39 = vld [vmem:[%s1832_s4 + $0x10] sm:$0xff]  ;;  %v997_v41 = vld [vmem:[%s1834_s6] sm:$0xff]  ;;  %p1407_p2 = scmp.lt.s32.totalorder %s1786_s9, %s1405_s18  ;;  %p1408_p3 = scmp.lt.s32.totalorder %s1406_s19, %s1400_s16 }
  0x28   : > { %p1403_p1 = pneg %p1402_p0 }
  0x29   : > { %1193 = vmatmul.mubr.msk.bf16.vlgmr.msra.gmra.mrb[0].mxu0 %vm402_vm0, %v1264_v21  ;;  %p1409_p4 = por %p1408_p3, %p1407_p2 }
  0x2a   : > { %1197 = vmatmul.mubr.msk.bf16.vlgmr.msra.gmra.mrb[0].mxu1 %vm402_vm0, %v1264_v21  ;;  %457 = vmatprep.mubr.bf16.mxu0 %v1464_v8 }
  0x2b   : > { %530 = vmatprep.mubr.bf16.mxu1 %v1464_v8  ;;  %344 = vperm.xlu0 %1262, %v330_v27   ;;  %p1410_p5 = pnand %p1409_p4, %p1403_p1 }
  0x2c   : > { %349 = vperm.xlu1 %1263, %v331_v28  }
  0x2f   : > { %354 = vperm.xlu0 %1262, %v332_v29  }
  0x30   : > { %359 = vperm.xlu1 %1263, %v333_v30  }
  0x31   : > { %1194 = vmatmul.mubr.msk.bf16.gmra.mrb[4].mxu0 %vm402_vm0, %v1265_v26 }
  0x32   : > { %1198 = vmatmul.mubr.msk.bf16.gmra.mrb[4].mxu1 %vm402_vm0, %v1265_v26  ;;  %467 = vmatprep.mubr.bf16.mxu0 %v1464_v8 }
  0x33   : > { %540 = vmatprep.mubr.bf16.mxu1 %v1464_v8  ;;  %703 = vperm.xlu0 %1262, %v669_v31  }
  0x34   : > { %708 = vperm.xlu1 %1263, %v670_v33  }
  0x37   : > { %713 = vperm.xlu0 %1262, %v671_v34  }
  0x38   : > { %718 = vperm.xlu1 %1263, %v672_v35  }
  0x39   : > { %1195 = vmatmul.mubr.msk.bf16.gmra.mrb[8].mxu0 %vm402_vm0, %v1266_v32 }
  0x3a   : > { %1199 = vmatmul.mubr.msk.bf16.gmra.mrb[8].mxu1 %vm402_vm0, %v1266_v32  ;;  %477 = vmatprep.mubr.bf16.mxu0 %v1464_v8 }
  0x3b   : > { %550 = vmatprep.mubr.bf16.mxu1 %v1464_v8  ;;  %683 = vperm.xlu0 %1262, %v665_v36  }
  0x3c   : > { %688 = vperm.xlu1 %1263, %v666_v38  }
  0x3f   : > { %693 = vperm.xlu0 %1262, %v667_v39  }
  0x40   : > { %698 = vperm.xlu1 %1263, %v668_v40  }
  0x41   : > { %1196 = vmatmul.mubr.msk.bf16.gmra.mrb[12].mxu0 %vm402_vm0, %v1267_v37 }
  0x42   : > { %1200 = vmatmul.mubr.msk.bf16.gmra.mrb[12].mxu1 %vm402_vm0, %v1267_v37  ;;  %786 = vmatprep.mubr.bf16.mxu0 %v1464_v8 }
  0x43   : > { %859 = vmatprep.mubr.bf16.mxu1 %v1464_v8  ;;  %1008 = vperm.xlu0 %1262, %v997_v41  }
  0xa0   : > { %v365_v50 = vpop.permute.xlu0 %364  ;;  %v375_v59 = vpop.permute.xlu1 %374 }
  0xa5   : > { %v370_v60 = vpop.permute.xlu0 %369 }
  0xa6   : > { %v380_v27 = vpop.permute.xlu1 %379 }
  0xfc   : > { %v1649_v42 = vpop.f32.mrb[0].mxu0 }
  0xfd   : > { %v1651_v43 = vpop.f32.mrb[0].mxu1  ;;  %v1653_v44 = vpop.f32.mrb[1].mxu0 }
  0xfe   : > { %v1655_v45 = vpop.f32.mrb[1].mxu1  ;;  %v1657_v46 = vpop.f32.mrb[2].mxu0 }
  0xff   : > { %v1659_v47 = vpop.f32.mrb[2].mxu1  ;;  %v1661_v48 = vpop.f32.mrb[3].mxu0 }
 0x100   : > { %v1663_v49 = vpop.f32.mrb[3].mxu1 }
 0x104   : > { %v1665_v51 = vpop.f32.mrb[4].mxu0 }
 0x105   : > { %v1667_v52 = vpop.f32.mrb[4].mxu1  ;;  %v1669_v53 = vpop.f32.mrb[5].mxu0 }
 0x106   : > { %v1671_v54 = vpop.f32.mrb[5].mxu1  ;;  %v1673_v55 = vpop.f32.mrb[6].mxu0 }
 0x107   : > { %v1675_v56 = vpop.f32.mrb[6].mxu1  ;;  %v1677_v57 = vpop.f32.mrb[7].mxu0 }
 0x108   : > { %v1679_v58 = vpop.f32.mrb[7].mxu1 }
 0x10c   : > { %v469_v61 = vpop.f32.mrb[8].mxu0 }
 0x10d   : > { %v470_v62 = vadd.f32 %v469_v61, %v365_v50  ;;  %v542_v63 = vpop.f32.mrb[8].mxu1  ;;  %v471_v0 = vpop.f32.mrb[9].mxu0 }
 0x10e   : > { %v543_v1 = vadd.f32 %v542_v63, %v365_v50  ;;  %v472_v2 = vadd.f32 %v471_v0, %v365_v50  ;;  %v544_v3 = vpop.f32.mrb[9].mxu1  ;;  %v473_v4 = vpop.f32.mrb[10].mxu0 }
 0x10f   : > { %v561_v5 = vsub.f32 0.0, %v470_v62  ;;  %v545_v6 = vadd.f32 %v544_v3, %v365_v50  ;;  %v474_v7 = vadd.f32 %v473_v4, %v370_v60  ;;  %v546_v9 = vpop.f32.mrb[10].mxu1  ;;  %v475_v10 = vpop.f32.mrb[11].mxu0 }
 0x110   : > { %v563_v11 = vsub.f32 0.0, %v543_v1  ;;  %v562_v12 = vsub.f32 0.0, %v472_v2  ;;  %v547_v13 = vadd.f32 %v546_v9, %v370_v60  ;;  %v476_v14 = vadd.f32 %v475_v10, %v370_v60  ;;  %v548_v15 = vpop.f32.mrb[11].mxu1 }
 0x111   : > { %v577_v16 = vmul.f32 1.442695, %v561_v5  ;;  %v564_v17 = vsub.f32 0.0, %v545_v6  ;;  %v565_v18 = vsub.f32 0.0, %v474_v7  ;;  %v549_v19 = vadd.f32 %v548_v15, %v370_v60 }
 0x112   : > { %v581_v20 = vmul.f32 1.442695, %v563_v11  ;;  %v579_v21 = vmul.f32 1.442695, %v562_v12  ;;  %v567_v22 = vsub.f32 0.0, %v547_v13  ;;  %v566_v23 = vsub.f32 0.0, %v476_v14 }
 0x113   : > { %1272 = vpow2.f32 %v577_v16  ;;  %v583_v24 = vmul.f32 1.442695, %v564_v17  ;;  %v585_v25 = vmul.f32 1.442695, %v565_v18  ;;  %v568_v26 = vsub.f32 0.0, %v549_v19 }
 0x114   : > { %1274 = vpow2.f32 %v581_v20  ;;  %v589_v28 = vmul.f32 1.442695, %v567_v22  ;;  %v479_v29 = vpop.f32.mrb[12].mxu0  ;;  %v587_v30 = vmul.f32 1.442695, %v566_v23 }
 0x115   : > { %1276 = vpow2.f32 %v579_v21  ;;  %v480_v31 = vadd.f32 %v479_v29, %v375_v59  ;;  %v552_v32 = vpop.f32.mrb[12].mxu1  ;;  %v481_v33 = vpop.f32.mrb[13].mxu0  ;;  %v591_v34 = vmul.f32 1.442695, %v568_v26 }
 0x116   : > { %1278 = vpow2.f32 %v583_v24  ;;  %v553_v35 = vadd.f32 %v552_v32, %v375_v59  ;;  %v482_v36 = vadd.f32 %v481_v33, %v375_v59  ;;  %v554_v37 = vpop.f32.mrb[13].mxu1  ;;  %v483_v38 = vpop.f32.mrb[14].mxu0 }
 0x117   : > { %1280 = vpow2.f32 %v585_v25  ;;  %v569_v39 = vsub.f32 0.0, %v480_v31  ;;  %v555_v40 = vadd.f32 %v554_v37, %v375_v59  ;;  %v484_v41 = vadd.f32 %v483_v38, %v380_v27  ;;  %v556_v50 = vpop.f32.mrb[14].mxu1  ;;  %v485_v60 = vpop.f32.mrb[15].mxu0 }
 0x118   : > { %1282 = vpow2.f32 %v589_v28  ;;  %v571_v61 = vsub.f32 0.0, %v553_v35  ;;  %v570_v62 = vsub.f32 0.0, %v482_v36  ;;  %v558_v63 = vpop.f32.mrb[15].mxu1  ;;  %v557_v16 = vadd.f32 %v556_v50, %v380_v27  ;;  %v345_v36 = vpop.permute.xlu0 %344 }
 0x119   : > { %1284 = vpow2.f32 %v587_v30  ;;  %v593_v0 = vmul.f32 1.442695, %v569_v39  ;;  %v572_v1 = vsub.f32 0.0, %v555_v40  ;;  %v573_v2 = vsub.f32 0.0, %v484_v41 }
 0x11a   : > { %1286 = vpow2.f32 %v591_v34  ;;  %v597_v3 = vmul.f32 1.442695, %v571_v61  ;;  %v595_v4 = vmul.f32 1.442695, %v570_v62  ;;  %v486_v19 = vadd.f32 %v485_v60, %v380_v27  ;;  %v350_v60 = vpop.permute.xlu1 %349 }
 0x11b   : > { %1288 = vpow2.f32 %v593_v0  ;;  %v599_v5 = vmul.f32 1.442695, %v572_v1  ;;  %v601_v6 = vmul.f32 1.442695, %v573_v2  ;;  %v559_v22 = vadd.f32 %v558_v63, %v380_v27 }
 0x11c   : > { %1290 = vpow2.f32 %v597_v3  ;;  %v575_v28 = vsub.f32 0.0, %v557_v16  ;;  %v574_v31 = vsub.f32 0.0, %v486_v19  ;;  %v450_v38 = vadd.f32 %v1649_v42, %v345_v36 }
 0x11d   : > { %v1273_v7 = vpop.eup %1272  ;;  %1292 = vpow2.f32 %v595_v4  ;;  %v576_v34 = vsub.f32 0.0, %v559_v22  ;;  %v523_v50 = vadd.f32 %v1651_v43, %v345_v36  ;;  %v452_v0 = vadd.f32 %v1653_v44, %v345_v36 }
 0x11e   : > { %v1275_v59 = vpop.eup %1274  ;;  %v609_v9 = vadd.f32 1.0, %v1273_v7  ;;  %1294 = vpow2.f32 %v599_v5  ;;  %v605_v40 = vmul.f32 1.442695, %v575_v28  ;;  %v603_v62 = vmul.f32 1.442695, %v574_v31 }
 0x11f   : > { %v1277_v10 = vpop.eup %1276  ;;  %v611_v11 = vadd.f32 1.0, %v1275_v59  ;;  %1296 = vpow2.f32 %v601_v6  ;;  %v607_v1 = vmul.f32 1.442695, %v576_v34  ;;  %v525_v4 = vadd.f32 %v1655_v45, %v345_v36 }
 0x120   : > { %v1279_v12 = vpop.eup %1278  ;;  %1298 = vrcp.f32 %v609_v9  ;;  %v610_v13 = vadd.f32 1.0, %v1277_v10  ;;  %v454_v6 = vadd.f32 %v1657_v46, %v350_v60  ;;  %v527_v59 = vadd.f32 %v1659_v47, %v350_v60 }
 0x121   : > { %v1281_v14 = vpop.eup %1280  ;;  %1300 = vrcp.f32 %v611_v11  ;;  %v612_v15 = vadd.f32 1.0, %v1279_v12  ;;  %v456_v44 = vadd.f32 %v1661_v48, %v350_v60  ;;  %v529_v45 = vadd.f32 %v1663_v49, %v350_v60 }
 0x122   : > { %v1283_v17 = vpop.eup %1282  ;;  %1302 = vrcp.f32 %v610_v13  ;;  %v613_v18 = vadd.f32 1.0, %v1281_v14  ;;  %v355_v13 = vpop.permute.xlu0 %354 }
 0x123   : > { %v1285_v20 = vpop.eup %1284  ;;  %1304 = vrcp.f32 %v612_v15  ;;  %v615_v21 = vadd.f32 1.0, %v1283_v17  ;;  %v460_v46 = vadd.f32 %v1665_v51, %v355_v13  ;;  %v533_v47 = vadd.f32 %v1667_v52, %v355_v13 }
 0x124   : > { %v1287_v23 = vpop.eup %1286  ;;  %1306 = vrcp.f32 %v613_v18  ;;  %v614_v24 = vadd.f32 1.0, %v1285_v20  ;;  %v462_v48 = vadd.f32 %v1669_v53, %v355_v13  ;;  %v535_v49 = vadd.f32 %v1671_v54, %v355_v13 }
 0x125   : > { %v1289_v25 = vpop.eup %1288  ;;  %1308 = vrcp.f32 %v615_v21  ;;  %v616_v26 = vadd.f32 1.0, %v1287_v23 }
 0x126   : > { %v1291_v29 = vpop.eup %1290  ;;  %1310 = vrcp.f32 %v614_v24  ;;  %v617_v30 = vadd.f32 1.0, %v1289_v25  ;;  %v360_v25 = vpop.permute.xlu1 %359 }
 0x127   : > { %v1293_v32 = vpop.eup %1292  ;;  %1312 = vrcp.f32 %v616_v26  ;;  %v619_v33 = vadd.f32 1.0, %v1291_v29  ;;  %v464_v51 = vadd.f32 %v1673_v55, %v360_v25  ;;  %v537_v55 = vadd.f32 %v1675_v56, %v360_v25  ;;  %v1269_v56 = vld [vmem:[%s1831_s3 + $0x8] sm:$0xff]  }
 0x128   : > { %v1295_v35 = vpop.eup %1294  ;;  %1314 = vrcp.f32 %v617_v30  ;;  %v618_v37 = vadd.f32 1.0, %v1293_v32 }
 0x129   : > { %v1297_v27 = vpop.eup %1296  ;;  %1316 = vrcp.f32 %v619_v33  ;;  %v620_v39 = vadd.f32 1.0, %v1295_v35 }
 0x12a   : > { %v1299_v41 = vpop.eup %1298  ;;  %1318 = vrcp.f32 %v618_v37  ;;  %v621_v61 = vadd.f32 1.0, %v1297_v27 }
 0x12b   : > { %v1301_v63 = vpop.eup %1300  ;;  %1320 = vrcp.f32 %v620_v39  ;;  %v641_v2 = vmul.f32 %v1299_v41, %v450_v38  ;;  %v466_v38 = vadd.f32 %v1677_v57, %v360_v25  ;;  %v1270_v57 = vld [vmem:[%s1831_s3 + $0x10] sm:$0xff]  }
 0x12c   : > { %v1303_v3 = vpop.eup %1302  ;;  %1322 = vrcp.f32 %v621_v61  ;;  %v643_v42 = vmul.f32 %v1301_v63, %v523_v50 }
 0x12d   : > { %v1305_v5 = vpop.eup %1304  ;;  %1324 = vpow2.f32 %v605_v40  ;;  %v642_v43 = vmul.f32 %v1303_v3, %v452_v0  ;;  %v539_v40 = vadd.f32 %v1679_v58, %v360_v25  ;;  %v1271_v58 = vld [vmem:[%s1831_s3 + $0x18] sm:$0xff]  }
 0x12e   : > { %v1307_v7 = vpop.eup %1306  ;;  %1326 = vpow2.f32 %v603_v62  ;;  %v644_v9 = vmul.f32 %v1305_v5, %v525_v4 }
 0x12f   : > { %v1309_v10 = vpop.eup %1308  ;;  %1328 = vpow2.f32 %v607_v1  ;;  %v645_v11 = vmul.f32 %v1307_v7, %v454_v6  ;;  %v1268_v1 = vld [vmem:[%s1831_s3] sm:$0xff]  }
 0x130   : > { %v1311_v12 = vpop.eup %1310  ;;  %v647_v14 = vmul.f32 %v1309_v10, %v527_v59 }
 0x131   : > { %v1313_v15 = vpop.eup %1312  ;;  %v646_v16 = vmul.f32 %v1311_v12, %v456_v44  ;;  %v673_v17 = vpack.c.bf16 %v645_v11, %v641_v2 }
 0x132   : > { %v1315_v18 = vpop.eup %1314  ;;  %v648_v19 = vmul.f32 %v1313_v15, %v529_v45  ;;  %v675_v20 = vpack.c.bf16 %v647_v14, %v643_v42  ;;  %v704_v45 = vpop.permute.xlu0 %703 }
 0x133   : > { %v1317_v21 = vpop.eup %1316  ;;  %v674_v22 = vpack.c.bf16 %v646_v16, %v642_v43  ;;  %v649_v23 = vmul.f32 %v1315_v18, %v460_v46  ;;  %v709_v14 = vpop.permute.xlu1 %708 }
 0x134   : > { %v1319_v24 = vpop.eup %1318  ;;  %v676_v26 = vpack.c.bf16 %v648_v19, %v644_v9  ;;  %v651_v28 = vmul.f32 %v1317_v21, %v533_v47 }
 0x135   : > { %v1321_v29 = vpop.eup %1320  ;;  %754 = vmatprep.subr.bf16.mxu0 %v674_v22  ;;  %v650_v30 = vmul.f32 %v1319_v24, %v462_v48 }
 0x136   : > { %v1323_v31 = vpop.eup %1322  ;;  %827 = vmatprep.subr.bf16.mxu1 %v676_v26  ;;  %755 = vmatpush1.bf16.msra.mxu0 %v673_v17  ;;  %v652_v52 = vmul.f32 %v1321_v29, %v535_v49 }
 0x137   : > { %v1325_v32 = vpop.eup %1324  ;;  %828 = vmatpush1.bf16.msra.mxu1 %v675_v20  ;;  %v653_v53 = vmul.f32 %v1323_v31, %v464_v51 }
 0x138   : > { %v1327_v33 = vpop.eup %1326  ;;  %v623_v34 = vadd.f32 1.0, %v1325_v32 }
 0x139   : > { %v1329_v35 = vpop.eup %1328  ;;  %v622_v36 = vadd.f32 1.0, %v1327_v33  ;;  %v677_v37 = vpack.c.bf16 %v653_v53, %v649_v23 }
 0x13a   : > { %1330 = vrcp.f32 %v623_v34  ;;  %v624_v54 = vadd.f32 1.0, %v1329_v35  ;;  %v714_v35 = vpop.permute.xlu0 %713 }
 0x13b   : > { %1332 = vrcp.f32 %v622_v36 }
 0x13c   : > { %1334 = vrcp.f32 %v624_v54 }
 0x144   : > { %v1331_v27 = vpop.eup %1330 }
 0x145   : > { %v1333_v39 = vpop.eup %1332  ;;  %v655_v41 = vmul.f32 %v1331_v27, %v537_v55  ;;  %v719_v55 = vpop.permute.xlu1 %718 }
 0x146   : > { %v1335_v50 = vpop.eup %1334  ;;  %v654_v60 = vmul.f32 %v1333_v39, %v466_v38 }
 0x147   : > { %v656_v61 = vmul.f32 %v1335_v50, %v539_v40  ;;  %v679_v62 = vpack.c.bf16 %v655_v41, %v651_v28 }
 0x148   : > { %v678_v63 = vpack.c.bf16 %v654_v60, %v650_v30 }
 0x149   : > { %v680_v0 = vpack.c.bf16 %v656_v61, %v652_v52 }
 0x14a   : > { %756 = vmatprep.subr.bf16.mxu0 %v678_v63 }
 0x14b   : > { %829 = vmatprep.subr.bf16.mxu1 %v680_v0  ;;  %757 = vmatpush1.bf16.msra.mxu0 %v677_v37 }
 0x14c   : > { %830 = vmatpush1.bf16.msra.mxu1 %v679_v62 }
 0x14e   : > { %1205 = vmatmul.mubr.msk.bf16.vlgmr.msra.gmra.mrb[16].mxu0 %vm741_vm1, %v1268_v1 }
 0x14f   : > { %1209 = vmatmul.mubr.msk.bf16.vlgmr.msra.gmra.mrb[16].mxu1 %vm741_vm1, %v1268_v1  ;;  %796 = vmatprep.mubr.bf16.mxu0 %v1464_v8 }
 0x150   : > { %869 = vmatprep.mubr.bf16.mxu1 %v1464_v8 }
 0x156   : > { %1206 = vmatmul.mubr.msk.bf16.gmra.mrb[20].mxu0 %vm741_vm1, %v1269_v56 }
 0x157   : > { %1210 = vmatmul.mubr.msk.bf16.gmra.mrb[20].mxu1 %vm741_vm1, %v1269_v56  ;;  %806 = vmatprep.mubr.bf16.mxu0 %v1464_v8 }
 0x158   : > { %879 = vmatprep.mubr.bf16.mxu1 %v1464_v8 }
 0x15e   : > { %1207 = vmatmul.mubr.msk.bf16.gmra.mrb[24].mxu0 %vm741_vm1, %v1270_v57 }
 0x15f   : > { %1211 = vmatmul.mubr.msk.bf16.gmra.mrb[24].mxu1 %vm741_vm1, %v1270_v57  ;;  %816 = vmatprep.mubr.bf16.mxu0 %v1464_v8 }
 0x160   : > { %889 = vmatprep.mubr.bf16.mxu1 %v1464_v8 }
 0x166   : > { %1208 = vmatmul.mubr.msk.bf16.gmra.mrb[28].mxu0 %vm741_vm1, %v1271_v58 }
 0x167   : > { %1212 = vmatmul.mubr.msk.bf16.gmra.mrb[28].mxu1 %vm741_vm1, %v1271_v58  ;;  %1046 = vmatprep.mubr.bf16.mxu0 %v1464_v8 }
 0x168   : > { %1087 = vmatprep.mubr.bf16.mxu1 %v1464_v8 }
 0x221   : > { %v1725_v2 = vpop.f32.mrb[16].mxu0 }
 0x222   : > { %v1727_v3 = vpop.f32.mrb[16].mxu1  ;;  %v1729_v4 = vpop.f32.mrb[17].mxu0 }
 0x223   : > { %v1731_v42 = vpop.f32.mrb[17].mxu1  ;;  %v1733_v5 = vpop.f32.mrb[18].mxu0 }
 0x224   : > { %v1735_v6 = vpop.f32.mrb[18].mxu1  ;;  %v1737_v43 = vpop.f32.mrb[19].mxu0 }
 0x225   : > { %v1739_v7 = vpop.f32.mrb[19].mxu1 }
 0x229   : > { %v1741_v59 = vpop.f32.mrb[20].mxu0 }
 0x22a   : > { %v1743_v9 = vpop.f32.mrb[20].mxu1  ;;  %v1745_v8 = vpop.f32.mrb[21].mxu0 }
 0x22b   : > { %v1747_v10 = vpop.f32.mrb[21].mxu1  ;;  %v1749_v44 = vpop.f32.mrb[22].mxu0 }
 0x22c   : > { %v1751_v11 = vpop.f32.mrb[22].mxu1  ;;  %v1753_v12 = vpop.f32.mrb[23].mxu0 }
 0x22d   : > { %v1755_v13 = vpop.f32.mrb[23].mxu1 }
 0x231   : > { %v808_v15 = vpop.f32.mrb[24].mxu0 }
 0x232   : > { %v809_v46 = vadd.f32 %v808_v15, %v704_v45  ;;  %v881_v16 = vpop.f32.mrb[24].mxu1  ;;  %v810_v17 = vpop.f32.mrb[25].mxu0 }
 0x233   : > { %v882_v18 = vadd.f32 %v881_v16, %v704_v45  ;;  %v811_v47 = vadd.f32 %v810_v17, %v704_v45  ;;  %v883_v19 = vpop.f32.mrb[25].mxu1  ;;  %v812_v20 = vpop.f32.mrb[26].mxu0 }
 0x234   : > { %v900_v21 = vsub.f32 0.0, %v809_v46  ;;  %v884_v48 = vadd.f32 %v883_v19, %v704_v45  ;;  %v813_v22 = vadd.f32 %v812_v20, %v709_v14  ;;  %v885_v23 = vpop.f32.mrb[26].mxu1  ;;  %v814_v24 = vpop.f32.mrb[27].mxu0 }
 0x235   : > { %v902_v25 = vsub.f32 0.0, %v882_v18  ;;  %v901_v49 = vsub.f32 0.0, %v811_v47  ;;  %v886_v26 = vadd.f32 %v885_v23, %v709_v14  ;;  %v815_v28 = vadd.f32 %v814_v24, %v709_v14  ;;  %v887_v29 = vpop.f32.mrb[27].mxu1 }
 0x236   : > { %v916_v51 = vmul.f32 1.442695, %v900_v21  ;;  %v903_v30 = vsub.f32 0.0, %v884_v48  ;;  %v904_v31 = vsub.f32 0.0, %v813_v22  ;;  %v888_v52 = vadd.f32 %v887_v29, %v709_v14 }
 0x237   : > { %v920_v32 = vmul.f32 1.442695, %v902_v25  ;;  %v918_v53 = vmul.f32 1.442695, %v901_v49  ;;  %v906_v33 = vsub.f32 0.0, %v886_v26  ;;  %v905_v34 = vsub.f32 0.0, %v815_v28 }
 0x238   : > { %1336 = vpow2.f32 %v916_v51  ;;  %v922_v36 = vmul.f32 1.442695, %v903_v30  ;;  %v924_v37 = vmul.f32 1.442695, %v904_v31  ;;  %v907_v54 = vsub.f32 0.0, %v888_v52 }
 0x239   : > { %1338 = vpow2.f32 %v920_v32  ;;  %v928_v27 = vmul.f32 1.442695, %v906_v33  ;;  %v818_v38 = vpop.f32.mrb[28].mxu0  ;;  %v926_v39 = vmul.f32 1.442695, %v905_v34 }
 0x23a   : > { %1340 = vpow2.f32 %v918_v53  ;;  %v819_v40 = vadd.f32 %v818_v38, %v714_v35  ;;  %v891_v41 = vpop.f32.mrb[28].mxu1  ;;  %v820_v50 = vpop.f32.mrb[29].mxu0  ;;  %v930_v60 = vmul.f32 1.442695, %v907_v54 }
 0x23b   : > { %1342 = vpow2.f32 %v922_v36  ;;  %v892_v61 = vadd.f32 %v891_v41, %v714_v35  ;;  %v821_v62 = vadd.f32 %v820_v50, %v714_v35  ;;  %v893_v63 = vpop.f32.mrb[29].mxu1  ;;  %v822_v0 = vpop.f32.mrb[30].mxu0 }
 0x23c   : > { %1344 = vpow2.f32 %v924_v37  ;;  %v908_v1 = vsub.f32 0.0, %v819_v40  ;;  %v894_v56 = vadd.f32 %v893_v63, %v714_v35  ;;  %v823_v57 = vadd.f32 %v822_v0, %v719_v55  ;;  %v895_v58 = vpop.f32.mrb[30].mxu1  ;;  %v824_v45 = vpop.f32.mrb[31].mxu0 }
 0x23d   : > { %1346 = vpow2.f32 %v928_v27  ;;  %v910_v14 = vsub.f32 0.0, %v892_v61  ;;  %v909_v15 = vsub.f32 0.0, %v821_v62  ;;  %v897_v46 = vpop.f32.mrb[31].mxu1  ;;  %v896_v51 = vadd.f32 %v895_v58, %v719_v55  ;;  %v684_v61 = vpop.permute.xlu0 %683 }
 0x23e   : > { %1348 = vpow2.f32 %v926_v39  ;;  %v932_v16 = vmul.f32 1.442695, %v908_v1  ;;  %v911_v17 = vsub.f32 0.0, %v894_v56  ;;  %v912_v18 = vsub.f32 0.0, %v823_v57 }
 0x23f   : > { %1350 = vpow2.f32 %v930_v60  ;;  %v936_v47 = vmul.f32 1.442695, %v910_v14  ;;  %v934_v19 = vmul.f32 1.442695, %v909_v15  ;;  %v825_v52 = vadd.f32 %v824_v45, %v719_v55 }
 0x240   : > { %1352 = vpow2.f32 %v932_v16  ;;  %v938_v20 = vmul.f32 1.442695, %v911_v17  ;;  %v940_v21 = vmul.f32 1.442695, %v912_v18  ;;  %v898_v33 = vadd.f32 %v897_v46, %v719_v55  ;;  %v689_v18 = vpop.permute.xlu1 %688 }
 0x241   : > { %1354 = vpow2.f32 %v936_v47  ;;  %v914_v54 = vsub.f32 0.0, %v896_v51  ;;  %v913_v39 = vsub.f32 0.0, %v825_v52  ;;  %v789_v63 = vadd.f32 %v1725_v2, %v684_v61 }
 0x242   : > { %v1337_v48 = vpop.eup %1336  ;;  %1356 = vpow2.f32 %v934_v19  ;;  %v915_v50 = vsub.f32 0.0, %v898_v33  ;;  %v862_v57 = vadd.f32 %v1727_v3, %v684_v61  ;;  %v791_v15 = vadd.f32 %v1729_v4, %v684_v61 }
 0x243   : > { %v1339_v22 = vpop.eup %1338  ;;  %v948_v23 = vadd.f32 1.0, %v1337_v48  ;;  %1358 = vpow2.f32 %v938_v20  ;;  %v944_v1 = vmul.f32 1.442695, %v914_v54  ;;  %v942_v45 = vmul.f32 1.442695, %v913_v39 }
 0x244   : > { %v1341_v24 = vpop.eup %1340  ;;  %v950_v25 = vadd.f32 1.0, %v1339_v22  ;;  %1360 = vpow2.f32 %v940_v21  ;;  %v946_v46 = vmul.f32 1.442695, %v915_v50  ;;  %v864_v47 = vadd.f32 %v1731_v42, %v684_v61 }
 0x245   : > { %v1343_v49 = vpop.eup %1342  ;;  %1362 = vrcp.f32 %v948_v23  ;;  %v949_v26 = vadd.f32 1.0, %v1341_v24  ;;  %v793_v20 = vadd.f32 %v1733_v5, %v689_v18  ;;  %v866_v48 = vadd.f32 %v1735_v6, %v689_v18 }
 0x246   : > { %v1345_v28 = vpop.eup %1344  ;;  %1364 = vrcp.f32 %v950_v25  ;;  %v951_v29 = vadd.f32 1.0, %v1343_v49  ;;  %v795_v23 = vadd.f32 %v1737_v43, %v689_v18  ;;  %v694_v49 = vpop.permute.xlu0 %693  ;;  %v868_v42 = vadd.f32 %v1739_v7, %v689_v18 }
 0x247   : > { %v1347_v30 = vpop.eup %1346  ;;  %1366 = vrcp.f32 %v949_v26  ;;  %v952_v31 = vadd.f32 1.0, %v1345_v28  ;;  %v799_v5 = vadd.f32 %v1741_v59, %v694_v49  ;;  %v872_v6 = vadd.f32 %v1743_v9, %v694_v49 }
 0x248   : > { %v1349_v32 = vpop.eup %1348  ;;  %1368 = vrcp.f32 %v951_v29  ;;  %v954_v53 = vadd.f32 1.0, %v1347_v30  ;;  %v801_v43 = vadd.f32 %v1745_v8, %v694_v49  ;;  %v874_v7 = vadd.f32 %v1747_v10, %v694_v49 }
 0x249   : > { %v1351_v34 = vpop.eup %1350  ;;  %1370 = vrcp.f32 %v952_v31  ;;  %v953_v35 = vadd.f32 1.0, %v1349_v32 }
 0x24a   : > { %v1353_v36 = vpop.eup %1352  ;;  %1372 = vrcp.f32 %v954_v53  ;;  %v955_v37 = vadd.f32 1.0, %v1351_v34 }
 0x24b   : > { %v1355_v27 = vpop.eup %1354  ;;  %1374 = vrcp.f32 %v953_v35  ;;  %v956_v38 = vadd.f32 1.0, %v1353_v36  ;;  %v699_v35 = vpop.permute.xlu1 %698 }
 0x24c   : > { %v1357_v40 = vpop.eup %1356  ;;  %1376 = vrcp.f32 %v955_v37  ;;  %v958_v41 = vadd.f32 1.0, %v1355_v27  ;;  %v803_v59 = vadd.f32 %v1749_v44, %v699_v35  ;;  %v876_v44 = vadd.f32 %v1751_v11, %v699_v35  ;;  %v996_v11 = vld [vmem:[%s1833_s5] sm:$0xf] }
 0x24d   : > { %v1359_v60 = vpop.eup %1358  ;;  %1378 = vrcp.f32 %v956_v38  ;;  %v957_v62 = vadd.f32 1.0, %v1357_v40 }
 0x24e   : > { %v1361_v55 = vpop.eup %1360  ;;  %1380 = vrcp.f32 %v958_v41  ;;  %v959_v0 = vadd.f32 1.0, %v1359_v60 }
 0x24f   : > { %v1363_v56 = vpop.eup %1362  ;;  %1382 = vrcp.f32 %v957_v62  ;;  %v960_v58 = vadd.f32 1.0, %v1361_v55  ;;  %v805_v55 = vadd.f32 %v1753_v12, %v699_v35  ;;  %v1009_v12 = vpop.permute.xlu0 %1008 }
 0x250   : > { %v1365_v14 = vpop.eup %1364  ;;  %1384 = vrcp.f32 %v959_v0  ;;  %v980_v16 = vmul.f32 %v1363_v56, %v789_v63  ;;  %v878_v0 = vadd.f32 %v1755_v13, %v699_v35 }
 0x251   : > { %v1367_v17 = vpop.eup %1366  ;;  %1386 = vrcp.f32 %v960_v58  ;;  %v982_v2 = vmul.f32 %v1365_v14, %v862_v57 }
 0x252   : > { %v1369_v19 = vpop.eup %1368  ;;  %1388 = vpow2.f32 %v944_v1  ;;  %v981_v3 = vmul.f32 %v1367_v17, %v791_v15 }
 0x253   : > { %v1371_v21 = vpop.eup %1370  ;;  %1390 = vpow2.f32 %v942_v45  ;;  %v983_v22 = vmul.f32 %v1369_v19, %v864_v47 }
 0x254   : > { %v1373_v4 = vpop.eup %1372  ;;  %1392 = vpow2.f32 %v946_v46  ;;  %v984_v24 = vmul.f32 %v1371_v21, %v793_v20 }
 0x255   : > { %v1375_v25 = vpop.eup %1374  ;;  %v986_v26 = vmul.f32 %v1373_v4, %v866_v48 }
 0x256   : > { %v1377_v28 = vpop.eup %1376  ;;  %v985_v29 = vmul.f32 %v1375_v25, %v795_v23  ;;  %v998_v51 = vpack.c.bf16 %v984_v24, %v980_v16 }
 0x257   : > { %v1379_v30 = vpop.eup %1378  ;;  %v987_v31 = vmul.f32 %v1377_v28, %v868_v42  ;;  %v1000_v52 = vpack.c.bf16 %v986_v26, %v982_v2 }
 0x258   : > { %v1381_v32 = vpop.eup %1380  ;;  %v999_v53 = vpack.c.bf16 %v985_v29, %v981_v3  ;;  %v988_v33 = vmul.f32 %v1379_v30, %v799_v5 }
 0x259   : > { %v1383_v34 = vpop.eup %1382  ;;  %v1001_v36 = vpack.c.bf16 %v987_v31, %v983_v22  ;;  %v990_v37 = vmul.f32 %v1381_v32, %v872_v6 }
 0x25a   : > { %v1385_v54 = vpop.eup %1384  ;;  %1014 = vmatprep.subr.bf16.mxu0 %v999_v53  ;;  %v989_v27 = vmul.f32 %v1383_v34, %v801_v43 }
 0x25b   : > { %v1387_v38 = vpop.eup %1386  ;;  %1055 = vmatprep.subr.bf16.mxu1 %v1001_v36  ;;  %1015 = vmatpush1.bf16.msra.mxu0 %v998_v51  ;;  %v991_v9 = vmul.f32 %v1385_v54, %v874_v7 }
 0x25c   : > { %v1389_v39 = vpop.eup %1388  ;;  %1056 = vmatpush1.bf16.msra.mxu1 %v1000_v52  ;;  %v992_v8 = vmul.f32 %v1387_v38, %v803_v59 }
 0x25d   : > { %v1391_v40 = vpop.eup %1390  ;;  %v962_v41 = vadd.f32 1.0, %v1389_v39 }
 0x25e   : > { %v1393_v50 = vpop.eup %1392  ;;  %v961_v60 = vadd.f32 1.0, %v1391_v40  ;;  %v1002_v61 = vpack.c.bf16 %v992_v8, %v988_v33 }
 0x25f   : > { %1394 = vrcp.f32 %v962_v41  ;;  %v963_v10 = vadd.f32 1.0, %v1393_v50 }
 0x260   : > { %1396 = vrcp.f32 %v961_v60 }
 0x261   : > { %1398 = vrcp.f32 %v963_v10 }
 0x269   : > { %v1395_v62 = vpop.eup %1394 }
 0x26a   : > { %v1397_v63 = vpop.eup %1396  ;;  %v994_v1 = vmul.f32 %v1395_v62, %v876_v44 }
 0x26b   : > { %v1399_v56 = vpop.eup %1398  ;;  %v993_v57 = vmul.f32 %v1397_v63, %v805_v55 }
 0x26c   : > { %v995_v58 = vmul.f32 %v1399_v56, %v878_v0  ;;  %v1004_v45 = vpack.c.bf16 %v994_v1, %v990_v37 }
 0x26d   : > { %v1003_v14 = vpack.c.bf16 %v993_v57, %v989_v27 }
 0x26e   : > { %v1005_v15 = vpack.c.bf16 %v995_v58, %v991_v9 }
 0x26f   : > { %1016 = vmatprep.subr.bf16.mxu0 %v1003_v14 }
 0x270   : > { %1057 = vmatprep.subr.bf16.mxu1 %v1005_v15  ;;  %1017 = vmatpush1.bf16.msra.mxu0 %v1002_v61 }
 0x271   : > { %1058 = vmatpush1.bf16.msra.mxu1 %v1004_v45 }
 0x273   : > { %1213 = vmatmul.mubr.msk.bf16.vlgmr.msra.gmra.mrb[32].mxu0 %vm741_vm1, %v996_v11 }
 0x274   : > { %1214 = vmatmul.mubr.msk.bf16.vlgmr.msra.gmra.mrb[32].mxu1 %vm741_vm1, %v996_v11 }
 0x346   : > { %v1048_v13 = vpop.f32.mrb[32].mxu0 }
 0x347   : > { %v1049_v46 = vadd.f32 %v1048_v13, %v1009_v12  ;;  %v1089_v16 = vpop.f32.mrb[32].mxu1  ;;  %v1050_v17 = vpop.f32.mrb[33].mxu0 }
 0x348   : > { %v1090_v18 = vadd.f32 %v1089_v16, %v1009_v12  ;;  %v1051_v47 = vadd.f32 %v1050_v17, %v1009_v12  ;;  %v1091_v2 = vpop.f32.mrb[33].mxu1  ;;  %v1052_v19 = vpop.f32.mrb[34].mxu0 }
 0x349   : > { %1096 = vst [vmem:[%s310_s8] sm:$0xff] %v1049_v46  ;;  %v1092_v20 = vadd.f32 %v1091_v2, %v1009_v12  ;;  %v1093_v3 = vpop.f32.mrb[34].mxu1  ;;  %v1053_v21 = vpop.f32.mrb[35].mxu0 }
 0x34a   : > { %1098 = vst [vmem:[%s310_s8 + $0x10] sm:$0xff] %v1090_v18  ;;  %1097 = vst [vmem:[%s310_s8 + $0x8] sm:$0xff] %v1051_v47  ;;  %v1094_v48 = vpop.f32.mrb[35].mxu1 }
 0x34b   : > { %1099 = vst [vmem:[%s310_s8 + $0x18] sm:$0xff] %v1092_v20 }
 0x34c   : > { %1413 = shalt.err (!%p1410_p5)
}
 0x34d   : > { %s1414_s20 = scalar_lea.hbm %s1784_s15, 512  ;;  %s1418_s23 = scalar_lea.hbm %s1835_s7, 1024 }
 0x34e   : > { %p1415_p7 = scmp.ne.s32.totalorder %s1784_s15, %s1414_s20  ;;  %p1419_p12 = scmp.lt.u32.totalorder %s1784_s15, %s1835_s7 }
 0x34f   : > { %p1420_p13 = scmp.lt.u32.totalorder %s1418_s23, %s1414_s20  ;;  %p1422_p1 = scmp.lt.u32.totalorder %s1414_s20, %s1784_s15 }
 0x350   : > { %p1416_p10 = pnand %p1415_p7, %p1544_p6 }
 0x351   : > { %p1421_p0 = por %p1420_p13, %p1419_p12 }
 0x352   : > { %p1417_p11 = pneg %p1416_p10 }
 0x353   : > { %p1423_p2 = por %p1422_p1, %p1421_p0 }
 0x355   : > { %p1424_p3 = pnand %p1423_p2, %p1417_p11 }
 0x357   : > { %1427 = shalt.err (!%p1424_p3)
}
 0x358   : > { %1222 = dma.vmem_to_hbm [thread:$0]  (%p1544_p6), %s1786_s9, 512, %s1784_s15, %s1101_s28  }
 0x359 PF: > { %s1127_s13 = sand.u32 1, %s1450_s24   ;;  %p1225_p4 = pnand %p1182_p9, %p1548_p8 }
 0x35a   : > { %s1128_s14 = scalar_lea.sflag [#allocation4], %s1127_s13 }
 0x35b   : > { %1445 = dma.done.wait (!%p1225_p4), %s1128_s14, 512  }
 0x35c   : > { %1447 = vsyncadd (!%p1225_p4), %s1128_s14, 4294966784  ;;  %p17_p5 = scmp.ge.s32.totalorder %s1529_s30, 4   ;;  %s1838_s24 = smov %s1454_s25 }
 0x35d   : > { %s1839_s25 = smov %s1458_s26  ;;  %s1840_s26 = smov %s1542_s10 }
 0x35e   : > { %s1841_s27 = smov %s1529_s30  ;;  %19 = sbr.rel (!%p17_p5) target bundleno = 3 (0x3), region = 111 }
 0x365   :  { %1133 = vsyncpa [#allocation4], 1 }
 0x366   :  { %1135 = vsyncpa [#allocation4 + $0x1], 1 }

</bundles_post_ra>
